<compile_context>
chip_gen: v7x
topology: tpu7x:2x2x1
jax: 0.10.0
libtpu: 0.0.40
codegen_flags: <defaults>
</compile_context>

<pallas_src>
import functools

import jax
import jax.numpy as jnp
from jax.experimental import pallas as pl
from jax.experimental.pallas import tpu as pltpu


def _sdpa_kernel(q_ref, kt_ref, v_ref, o_ref, acc_ref, *, inv_scale,
                 compute_dtype):
    """One (batch, q-tile, k-tile) grid step.

    q_ref:  [tq, D]   query tile (batch dim squeezed)
    kt_ref: [D, tk]   pre-transposed key tile (lane-dense last dim)
    v_ref:  [tk, Dv]  value tile
    acc_ref: f32 [tq, Dv] accumulator, resident across the k (reduction) axis.
    """
    ki = pl.program_id(2)

    @pl.when(ki == 0)
    def _():
        acc_ref[...] = jnp.zeros_like(acc_ref)

    q = q_ref[...]
    kt = kt_ref[...]
    v = v_ref[...]
    if compute_dtype is not None:
        q = q.astype(compute_dtype)
        kt = kt.astype(compute_dtype)
        v = v.astype(compute_dtype)

    # Q @ K^T: K is pre-transposed once in the wrapper, so this is a canonical
    # [tq, D] x [D, tk] MXU matmul (no per-step XLU transpose of the K tile).
    scores = jnp.dot(q, kt, preferred_element_type=jnp.float32)
    if compute_dtype is not None:
        scores = scores.astype(compute_dtype)

    acc_ref[...] += jnp.dot(scores, v, preferred_element_type=jnp.float32)

    @pl.when(ki == pl.num_programs(2) - 1)
    def _():
        # 1/sqrt(embeddings_dim) applied once per q tile at finalize
        # ((Q K^T) V / s == (Q K^T / s) V), hoisted out of the reduction loop.
        o_ref[...] = (acc_ref[...] * jnp.float32(inv_scale)).astype(o_ref.dtype)


def _round_up(x, m):
    return ((x + m - 1) // m) * m


def _tile_footprint_bytes(tq, tk, d, dv):
    # Double-buffered input/output tiles + f32 accumulator + f32 scores tile.
    tiles = 2 * (tq * d + tk * d + tk * dv + tq * dv) * 4
    return tiles + tq * dv * 4 + tq * tk * 4


def _plan_tiles(batch, sq, sk, d, dv, vmem_budget_bytes):
    """Pick (tq, tk) respecting the (8, 128) layout rules and a VMEM budget."""
    # K-tile: moderate (bounds the f32 scores buffer), lane/layout aligned.
    if sk <= 512:
        tk = _round_up(sk, 8)          # full (padded) extent -> always legal
    else:
        tk = 512                       # multiple of 128

    # Q-tile: as large as the budget allows -> fewer K/V HBM re-streams and
    # fewer ~0.35us grid steps.  Keep >= 2 q tiles when batch == 1 so both
    # v7x TensorCores get work through the "parallel" grid axes.
    tq_cap = _round_up(sq, 8)
    if batch == 1 and sq > 8:
        tq_cap = max(8, _round_up((sq + 1) // 2, 8))
    tq = min(2048, tq_cap)

    while _tile_footprint_bytes(tq, tk, d, dv) > vmem_budget_bytes and tq > 8:
        tq = max(8, _round_up(tq // 2, 8))
    while _tile_footprint_bytes(tq, tk, d, dv) > vmem_budget_bytes and tk > 128:
        tk = max(128, _round_up(tk // 2, 128))
    return tq, tk


def scaled_dot_product_attention(query, key, value, embeddings_dim, *,
                                 compute_dtype=None,
                                 vmem_budget_bytes=40 << 20):
    """query: [B, Sq, D], key: [B, Sk, D], value: [B, Sk, Dv] -> [B, Sq, Dv].

    Mirrors the PyTorch forward (which never applies its softmax):
        out = (query @ key^T) / sqrt(embeddings_dim) @ value
    compute_dtype=jnp.bfloat16 optionally runs both matmuls on the MXU in bf16
    with f32 accumulation (faster, slightly different numerics).
    """
    b, sq, d = query.shape
    bk, sk, dk = key.shape
    bv, skv, dv = value.shape
    assert b == bk == bv and d == dk and sk == skv

    tq, tk = _plan_tiles(b, sq, sk, d, dv, vmem_budget_bytes)
    sq_pad = _round_up(sq, tq)
    sk_pad = _round_up(sk, tk)

    # Pre-transpose K once in the wrapper: both in-kernel matmuls become
    # canonical [M,K]x[K,N] MXU feeds; amortized over all q tiles.
    key_t = jnp.swapaxes(key, -1, -2)                        # [B, D, Sk]

    # Zero-pad ragged sequence dims: zero K columns / V rows contribute 0 to
    # the accumulator; padded Q rows are sliced off below.
    if sq_pad != sq:
        query = jnp.pad(query, ((0, 0), (0, sq_pad - sq), (0, 0)))
    if sk_pad != sk:
        key_t = jnp.pad(key_t, ((0, 0), (0, 0), (0, sk_pad - sk)))
        value = jnp.pad(value, ((0, 0), (0, sk_pad - sk), (0, 0)))

    grid = (b, sq_pad // tq, sk_pad // tk)
    inv_scale = 1.0 / (float(embeddings_dim) ** 0.5)         # trace-time const

    kernel = functools.partial(_sdpa_kernel, inv_scale=inv_scale,
                               compute_dtype=compute_dtype)

    # Explicit scoped-VMEM limit sized from the tile footprint (with slack),
    # capped at 48 MiB so it stays inside v7x's 64 MiB physical VMEM.
    footprint = _tile_footprint_bytes(tq, tk, d, dv)
    vmem_limit = int(min(max(2 * footprint, 32 << 20), 48 << 20))

    grid_spec = pltpu.PrefetchScalarGridSpec(
        num_scalar_prefetch=0,
        grid=grid,
        in_specs=[
            # Q tile: constant across the k (reduction) axis.
            pl.BlockSpec((pl.Squeezed(), tq, d), lambda bi, qi, ki: (bi, qi, 0)),
            # K^T tile: independent of the q-tile axis; lane-dense last dim.
            pl.BlockSpec((pl.Squeezed(), d, tk), lambda bi, qi, ki: (bi, 0, ki)),
            # V tile.
            pl.BlockSpec((pl.Squeezed(), tk, dv), lambda bi, qi, ki: (bi, ki, 0)),
        ],
        # Output block constant across the k axis -> resident accumulator.
        # Dv < 128 => masked stores on the writeback tail; accepted knowingly.
        out_specs=pl.BlockSpec((pl.Squeezed(), tq, dv),
                               lambda bi, qi, ki: (bi, qi, 0)),
        scratch_shapes=[pltpu.VMEM((tq, dv), jnp.float32)],
    )

    out = pl.pallas_call(
        kernel,
        out_shape=jax.ShapeDtypeStruct((b, sq_pad, dv), query.dtype),
        grid_spec=grid_spec,
        compiler_params=pltpu.CompilerParams(
            dimension_semantics=("parallel", "parallel", "arbitrary"),
            vmem_limit_bytes=vmem_limit),
    )(query, key_t, value)

    if sq_pad != sq:
        out = out[:, :sq, :]
    return out


if __name__ == "__main__":
    def _ref(q, k, v, d):
        # Pure-JAX mirror of the PyTorch forward (no softmax is applied there).
        return q @ jnp.swapaxes(k, -1, -2) / (d ** 0.5) @ v

    rng = jax.random.PRNGKey(0)

    # 1) Small shapes implied by the module: batch=2, seq=8, hidden=32.
    B, S, D = 2, 8, 32
    kq, kk, kv, rng = jax.random.split(rng, 4)
    query = jax.random.normal(kq, (B, S, D), dtype=jnp.float32)
    key = jax.random.normal(kk, (B, S, D), dtype=jnp.float32)
    value = jax.random.normal(kv, (B, S, D), dtype=jnp.float32)

    out = jax.block_until_ready(
        scaled_dot_product_attention(query, key, value, D))
    assert out.shape == (B, S, D)
    assert jnp.allclose(out, _ref(query, key, value, D), rtol=1e-4, atol=1e-4)

    # 2) Long sequence: exercises the tiled reduction / resident-accumulator
    #    path and the B==1 q-split (grid = (1, 2, 2)).
    B2, S2, D2 = 1, 1024, 64
    kq, kk, kv, rng = jax.random.split(rng, 4)
    q2 = jax.random.normal(kq, (B2, S2, D2), dtype=jnp.float32)
    k2 = jax.random.normal(kk, (B2, S2, D2), dtype=jnp.float32)
    v2 = jax.random.normal(kv, (B2, S2, D2), dtype=jnp.float32)

    out2 = jax.block_until_ready(scaled_dot_product_attention(q2, k2, v2, D2))
    assert out2.shape == (B2, S2, D2)
    assert jnp.allclose(out2, _ref(q2, k2, v2, D2), rtol=1e-3, atol=1e-3)

    # 3) Ragged shapes: exercises the zero-padding path (Sq 100->104, Sk 60->64).
    B3, Sq3, Sk3, D3 = 2, 100, 60, 32
    kq, kk, kv, rng = jax.random.split(rng, 4)
    q3 = jax.random.normal(kq, (B3, Sq3, D3), dtype=jnp.float32)
    k3 = jax.random.normal(kk, (B3, Sk3, D3), dtype=jnp.float32)
    v3 = jax.random.normal(kv, (B3, Sk3, D3), dtype=jnp.float32)

    out3 = jax.block_until_ready(scaled_dot_product_attention(q3, k3, v3, D3))
    assert out3.shape == (B3, Sq3, D3)
    assert jnp.allclose(out3, _ref(q3, k3, v3, D3), rtol=1e-4, atol=1e-4)

    # 4) Optional bf16 MXU path (f32 accumulation): looser tolerance.
    out_bf16 = jax.block_until_ready(
        scaled_dot_product_attention(q2, k2, v2, D2,
                                     compute_dtype=jnp.bfloat16))
    assert out_bf16.shape == (B2, S2, D2)
    assert jnp.allclose(out_bf16, _ref(q2, k2, v2, D2), rtol=5e-2, atol=5e-1)

    print("KERNEL_OK")
</pallas_src>

<mosaic_0001>
module attributes {stable_mosaic.version = 11 : i64} {
  func.func @_sdpa_kernel(%arg0: i32, %arg1: i32, %arg2: i32, %arg3: memref<1x8x32xf32, #tpu.memory_space<vmem>>, %arg4: memref<1x32x8xf32, #tpu.memory_space<vmem>>, %arg5: memref<1x8x32xf32, #tpu.memory_space<vmem>>, %arg6: memref<1x8x32xf32, #tpu.memory_space<vmem>>, %arg7: memref<8x32xf32, #tpu.memory_space<vmem>>) attributes {dimension_semantics = [#tpu.dimension_semantics<parallel>, #tpu.dimension_semantics<parallel>, #tpu.dimension_semantics<arbitrary>], iteration_bounds = array<i64: 2, 1, 1>, scalar_prefetch = 0 : i64, scratch_operands = 1 : i64, tpu.core_type = #tpu.core_type<tc>, window_params = [{transform_indices = @transform_0, window_bounds = array<i64: 1, 8, 32>}, {transform_indices = @transform_1, window_bounds = array<i64: 1, 32, 8>}, {transform_indices = @transform_2, window_bounds = array<i64: 1, 8, 32>}, {transform_indices = @transform_3, window_bounds = array<i64: 1, 8, 32>}]} {
    %c0_i32 = arith.constant 0 : i32
    %0 = arith.cmpi eq, %arg2, %c0_i32 : i32
    %1 = arith.extui %0 : i1 to i32
    %c0_i32_0 = arith.constant 0 : i32
    %2 = arith.cmpi ne, %1, %c0_i32_0 : i32
    scf.if %2 {
      %cst_16 = arith.constant 0.000000e+00 : f32
      %17 = vector.broadcast %cst_16 : f32 to vector<8x32xf32>
      %c0_17 = arith.constant 0 : index
      %c0_18 = arith.constant 0 : index
      %18 = vector.load %arg7[%c0_17, %c0_18] : memref<8x32xf32, #tpu.memory_space<vmem>>, vector<8x32xf32>
      tpu.vector_store %arg7[%c0_17, %c0_18], %17 {strides = array<i32>} : memref<8x32xf32, #tpu.memory_space<vmem>>, vector<8x32xf32>,
    } else {
    }
    %c0 = arith.constant 0 : index
    %c0_1 = arith.constant 0 : index
    %c0_2 = arith.constant 0 : index
    %3 = vector.load %arg3[%c0, %c0_1, %c0_2] : memref<1x8x32xf32, #tpu.memory_space<vmem>>, vector<1x8x32xf32>
    %4 = vector.shape_cast %3 : vector<1x8x32xf32> to vector<8x32xf32>
    %c0_3 = arith.constant 0 : index
    %c0_4 = arith.constant 0 : index
    %c0_5 = arith.constant 0 : index
    %5 = vector.load %arg4[%c0_3, %c0_4, %c0_5] : memref<1x32x8xf32, #tpu.memory_space<vmem>>, vector<1x32x8xf32>
    %6 = vector.shape_cast %5 : vector<1x32x8xf32> to vector<32x8xf32>
    %c0_6 = arith.constant 0 : index
    %c0_7 = arith.constant 0 : index
    %c0_8 = arith.constant 0 : index
    %7 = vector.load %arg5[%c0_6, %c0_7, %c0_8] : memref<1x8x32xf32, #tpu.memory_space<vmem>>, vector<1x8x32xf32>
    %8 = vector.shape_cast %7 : vector<1x8x32xf32> to vector<8x32xf32>
    %cst = arith.constant dense<0.000000e+00> : vector<8x8xf32>
    %9 = tpu.matmul %4, %6, %cst {dimension_numbers = #tpu.dot_dimension_numbers<[1], [0], [0], [1], [0, 0, 1, 1], [], []>} : vector<8x32xf32>, vector<32x8xf32>, vector<8x8xf32> -> vector<8x8xf32>
    %c0_9 = arith.constant 0 : index
    %c0_10 = arith.constant 0 : index
    %10 = vector.load %arg7[%c0_9, %c0_10] : memref<8x32xf32, #tpu.memory_space<vmem>>, vector<8x32xf32>
    %cst_11 = arith.constant dense<0.000000e+00> : vector<8x32xf32>
    %11 = tpu.matmul %9, %8, %cst_11 {dimension_numbers = #tpu.dot_dimension_numbers<[1], [0], [0], [1], [0, 0, 1, 1], [], []>} : vector<8x8xf32>, vector<8x32xf32>, vector<8x32xf32> -> vector<8x32xf32>
    %12 = arith.addf %10, %11 : vector<8x32xf32>
    %c0_12 = arith.constant 0 : index
    %c0_13 = arith.constant 0 : index
    %13 = vector.load %arg7[%c0_12, %c0_13] : memref<8x32xf32, #tpu.memory_space<vmem>>, vector<8x32xf32>
    tpu.vector_store %arg7[%c0_12, %c0_13], %12 {strides = array<i32>} : memref<8x32xf32, #tpu.memory_space<vmem>>, vector<8x32xf32>,
    %c0_i32_14 = arith.constant 0 : i32
    %14 = arith.cmpi eq, %arg2, %c0_i32_14 : i32
    %15 = arith.extui %14 : i1 to i32
    %c0_i32_15 = arith.constant 0 : i32
    %16 = arith.cmpi ne, %15, %c0_i32_15 : i32
    scf.if %16 {
      %c0_16 = arith.constant 0 : index
      %c0_17 = arith.constant 0 : index
      %17 = vector.load %arg7[%c0_16, %c0_17] : memref<8x32xf32, #tpu.memory_space<vmem>>, vector<8x32xf32>
      %cst_18 = arith.constant 0.176776692 : f32
      %18 = vector.broadcast %cst_18 : f32 to vector<8x32xf32>
      %19 = arith.mulf %17, %18 : vector<8x32xf32>
      %c0_19 = arith.constant 0 : index
      %c0_20 = arith.constant 0 : index
      %c0_21 = arith.constant 0 : index
      %20 = vector.load %arg6[%c0_19, %c0_20, %c0_21] : memref<1x8x32xf32, #tpu.memory_space<vmem>>, vector<1x8x32xf32>
      %21 = vector.shape_cast %20 : vector<1x8x32xf32> to vector<8x32xf32>
      %22 = vector.shape_cast %19 : vector<8x32xf32> to vector<1x8x32xf32>
      tpu.vector_store %arg6[%c0_19, %c0_20, %c0_21], %22 {strides = array<i32>} : memref<1x8x32xf32, #tpu.memory_space<vmem>>, vector<1x8x32xf32>,
    } else {
    }
    return
  }
  func.func @transform_0(%arg0: i32, %arg1: i32, %arg2: i32) -> (i32, i32, i32) {
    %c0_i32 = arith.constant 0 : i32
    %c0_i32_0 = arith.constant 0 : i32
    return %arg0, %arg1, %c0_i32 : i32, i32, i32
  }
  func.func @transform_1(%arg0: i32, %arg1: i32, %arg2: i32) -> (i32, i32, i32) {
    %c0_i32 = arith.constant 0 : i32
    %c0_i32_0 = arith.constant 0 : i32
    return %arg0, %c0_i32, %arg2 : i32, i32, i32
  }
  func.func @transform_2(%arg0: i32, %arg1: i32, %arg2: i32) -> (i32, i32, i32) {
    %c0_i32 = arith.constant 0 : i32
    %c0_i32_0 = arith.constant 0 : i32
    return %arg0, %arg2, %c0_i32 : i32, i32, i32
  }
  func.func @transform_3(%arg0: i32, %arg1: i32, %arg2: i32) -> (i32, i32, i32) {
    %c0_i32 = arith.constant 0 : i32
    %c0_i32_0 = arith.constant 0 : i32
    return %arg0, %arg1, %c0_i32 : i32, i32, i32
  }
}

</mosaic_0001>

<bundles_post_ra>
// kernel: tpu_custom_call.1
= control target key start
LH: loop header
LB: loop body
LE: loop exit
PB: predicated region body
PF: predicated region fallthrough
CT: control target
= control target key end

     0   :  { %8 = vsyncpa [#allocation4], 0  ;;  %s878_s0 = inlined_call_operand.vmem [shape: f32[2,8,32], index: 0, kind: input, shape index: {}]   ;;  %s879_s1 = inlined_call_operand.vmem [shape: f32[2,32,8], index: 1, kind: input, shape index: {}]   ;;  %s880_s2 = inlined_call_operand.vmem [shape: f32[2,8,32], index: 2, kind: input, shape index: {}]   ;;  %s881_s3 = inlined_call_operand.hbm [shape: f32[2,8,32], index: 3, kind: output, shape index: {}]  }
   0x1   :  { %10 = vsyncpa [#allocation4 + $0x1], 0  ;;  %s756_s12 = smov 0   ;;  %s758_s13 = smov 0  }
   0x2   :  { %s760_s14 = smov 0   ;;  %s762_s15 = smov 0  }
   0x3   :  { %s764_s16 = smov 0   ;;  %s766_s17 = smov 0  }
   0x4 LB: > { %s548_s18 = sadd.s32 4294967295, %s730_s17   ;;  %s549_s19 = sadd.s32 4294967294, %s730_s17   ;;  %s730_s17 = sphi %s766_s17, %s16_s17   ;;  %s726_s16 = sphi %s764_s16, %s888_s16   ;;  %s722_s15 = sphi %s762_s15, %s887_s15   ;;  %s718_s14 = sphi %s760_s14, %s886_s14   ;;  %s714_s13 = sphi %s758_s13, %s885_s13   ;;  %s710_s12 = sphi %s756_s12, %s884_s12  }
   0x5   : > { %s35_s20 = sadd.s32 1, %s726_s16  ;;  %s128_s21 = sadd.s32 1, %s718_s14 }
   0x6   : > { %p37_p0 = scmp.ge.s32.totalorder %s35_s20, 2  ;;  %p138_p1 = scmp.ne.s32.totalorder %s718_s14, %s714_s13 }
   0x7   : > { %p139_p2 = scmp.eq.s32.totalorder %s548_s18, 1  ;;  %p144_p3 = scmp.ne.s32.totalorder %s714_s13, %s710_s12 }
   0x8   : > { %s890_s20 = smov (%p37_p0, %s35_s20), 0  ;;  %p145_p5 = scmp.eq.s32.totalorder %s549_s19, 1 }
   0x9   : > { %p796_p4 = por %p139_p2, %p138_p1  ;;  %s123_s23 = ssub.s32 %s726_s16, %s890_s20 }
   0xa   : > { %p552_p6 = scmp.ge.s32.totalorder %s730_s17, 1  ;;  %p126_p7 = scmp.eq.s32.totalorder %s123_s23, 0 }
   0xb   : > { %p803_p8 = por %p145_p5, %p144_p3  ;;  %p194_p9 = scmp.lt.s32.totalorder %s730_s17, 3 }
   0xc   : > { %s809_s25 = scalar_select %p126_p7, %s718_s14, %s128_s21  }
   0xd   : > { %p195_p10 = pnand %p552_p6, %p194_p9 }
   0xe   : > { %p235_p11 = scmp.lt.s32.totalorder (!%p195_p10), %s722_s15, 1  ;;  %vm261_vm0 = vcmask (!%p195_p10), 261120   ;;  %v732_v0 = vmov (!%p195_p10), 0.0|0.0   ;;  %vm733_vm1 = vmmov (!%p195_p10), 0   ;;  %v734_v1 = vmov (!%p195_p10), 0.0   ;;  %s232_s11 = sand.u32 (!%p195_p10), 1, %s714_s13  }
   0xf   : > { %198 = sbr.rel (%p195_p10) target bundleno = 486 (0x1e6), region = 32  ;;  %588 = vmatprep.subr.bf16.mxu0 (!%p195_p10), %v732_v0  ;;  %580 = vmatprep.mubr.msk.f32.mxu0 (!%p195_p10), %vm733_vm1, %v734_v1  ;;  %262 = vst.msk [vmem:[#allocation2] sm:$0xff] (!%p195_p10), %vm261_vm0, %v734_v1  ;;  %vm344_vm2 = vcmask (!%p195_p10), 64512   ;;  %s553_s18 = sshll.u32 (!%p195_p10), %s232_s11, 3 }
  0x10   : > { %583 = vmatprep.subr.mxu1 (!%p195_p10), %v734_v1  ;;  %585 = vmatprep.mubr.msk.f32.mxu1 (!%p195_p10), %vm733_vm1, %v734_v1  ;;  %s561_s19 = sshll.u32 (!%p195_p10), %s722_s15, 7  ;;  %s234_s21 = scalar_lea.vmem (!%p195_p10), [#allocation3], %s553_s18 }
  0x11   : > { %s441_s23 = sshll.u32 (!%p195_p10), %s234_s21, 4  ;;  %s830_s28 = scalar_lea.hbm (!%p195_p10), %s881_s3, %s561_s19  ;;  %s832_s23 = int_to_ptr.vmem [resolvable:$true] %s441_s23 }
  0x12   : > { %s427_s29 = scalar_lea.sflag (!%p195_p10), [#allocation4], %s232_s11 }
  0x16   : > { %s236_s26 = scalar_select %p235_p11, %s722_s15, 1  ;;  %v343_v12 = vld [vmem:[#allocation2] sm:$0xff] }
  0x17   : > { %s735_s15 = smov [#allocation3]  }
  0x18   : > { %s564_s27 = sshll.u32 %s236_s26, 5  ;;  %s554_s4 = sshll.u32 %s236_s26, 3 }
  0x19   : > { %s249_s30 = scalar_lea.vmem %s879_s1, %s564_s27  ;;  %s241_s7 = scalar_lea.vmem %s878_s0, %s554_s4 }
  0x1a   : > { %v264_v2 = vld [vmem:[%s249_s30] sm:$0xff]  ;;  %v265_v3 = vld [vmem:[%s249_s30 + $0x8] sm:$0xff]  ;;  %v266_v4 = vld [vmem:[%s249_s30 + $0x10] sm:$0xff]  ;;  %s256_s10 = scalar_lea.vmem %s880_s2, %s554_s4  ;;  %s656_s4 = sshll.u32 %s735_s15, 4  ;;  %s657_s4 = int_to_ptr.vmem [resolvable:$false] %s656_s4 }
  0x1b   : > { %v589_v5 = vpack.c.bf16 %v265_v3, %v264_v2  ;;  %v267_v6 = vld [vmem:[%s249_s30 + $0x18] sm:$0xff]  ;;  %v263_v8 = vld [vmem:[%s241_s7] sm:$0xff]  ;;  %s652_s30 = scalar_lea.vmem %s832_s23, 128  ;;  %s658_s5 = scalar_lea.vmem %s657_s4, 256 }
  0x1c   : > { %v592_v7 = vpack.c.bf16 %v267_v6, %v266_v4  ;;  %v268_v9 = vld [vmem:[%s256_s10] sm:$0xff]  ;;  %p653_p12 = scmp.ne.s32.totalorder %s832_s23, %s652_s30  ;;  %p659_p1 = scmp.lt.s32.totalorder %s832_s23, %s657_s4 }
  0x1d   : > { %590 = vmatpush3.bf16.msra.mxu0 %v589_v5  ;;  %584 = vmatpush3.msra.mxu1 %v268_v9  ;;  %p660_p2 = scmp.lt.s32.totalorder %s658_s5, %s652_s30 }
  0x1e   : > { %591 = vmatprep.subr.bf16.mxu0 %v732_v0  ;;  %p654_p13 = pnand %p653_p12, %p796_p4 }
  0x1f   : > { %p661_p3 = por %p660_p2, %p659_p1 }
  0x20   : > { %p655_p0 = pneg %p654_p13 }
  0x21   : > { %593 = vmatpush3.bf16.msra.mxu0 %v592_v7 }
  0x22   : > { %p662_p5 = pnand %p661_p3, %p655_p0 }
  0x24   : > { %581 = vmatmul.mubr.msk.f32.vlgmr.msra.gmra.mrb[0].mxu0 %vm261_vm0, %v263_v8 }
  0xf7   : > { %v339_v10 = vpop.f32.mrb[0].mxu0 }
  0xf8   : > { %v582_v11 = vpop.f32.mrb[1].mxu0  ;;  %586 = vmatmul.mubr.msk.f32.vlgmr.msra.gmra.mrb[0].mxu1 %vm344_vm2, %v339_v10 }
 0x1cb   : > { %v414_v13 = vpop.f32.mrb[0].mxu1 }
 0x1cc   : > { %v418_v14 = vadd.f32 %v414_v13, %v343_v12  ;;  %v587_v15 = vpop.f32.mrb[1].mxu1 }
 0x1ce   : > { %419 = vst.msk [vmem:[#allocation2] sm:$0xff] %vm261_vm0, %v418_v14 }
 0x1d5   : > { %v423_v16 = vld [vmem:[#allocation2] sm:$0xff] }
 0x1d6   : > { %v424_v17 = vmul.f32 0.17677669, %v423_v16 }
 0x1d8   : > { %425 = vst.msk [vmem:[%s234_s21] sm:$0xff] %vm261_vm0, %v424_v17 }
 0x1d9   : > { %665 = shalt.err (!%p662_p5)
}
 0x1da   : > { %s666_s6 = scalar_lea.hbm %s830_s28, 128  ;;  %s670_s9 = scalar_lea.hbm %s881_s3, 256 }
 0x1db   : > { %p667_p6 = scmp.ne.s32.totalorder %s830_s28, %s666_s6  ;;  %p671_p10 = scmp.lt.u32.totalorder %s830_s28, %s881_s3 }
 0x1dc   : > { %p672_p11 = scmp.lt.u32.totalorder %s670_s9, %s666_s6  ;;  %p674_p13 = scmp.lt.u32.totalorder %s666_s6, %s830_s28 }
 0x1dd   : > { %p668_p7 = pnand %p667_p6, %p796_p4 }
 0x1de   : > { %p673_p12 = por %p672_p11, %p671_p10 }
 0x1df   : > { %p669_p9 = pneg %p668_p7 }
 0x1e0   : > { %p675_p0 = por %p674_p13, %p673_p12 }
 0x1e2   : > { %p676_p1 = pnand %p675_p0, %p669_p9 }
 0x1e4   : > { %679 = shalt.err (!%p676_p1)
}
 0x1e5   : > { %594 = dma.vmem_to_hbm [thread:$0]  (%p796_p4), %s832_s23, 128, %s830_s28, %s427_s29  }
 0x1e6 PF: > { %p600_p2 = scmp.ge.s32.totalorder %s730_s17, 2  ;;  %s453_s18 = sand.u32 1, %s710_s12  }
 0x1e7   : > { %s454_s19 = scalar_lea.sflag [#allocation4], %s453_s18 }
 0x1e8   : > { %p597_p3 = pnand %p600_p2, %p803_p8 }
 0x1ea   : > { %705 = dma.done.wait (!%p597_p3), %s454_s19, 128  }
 0x1eb   : > { %707 = vsyncadd (!%p597_p3), %s454_s19, 4294967168  ;;  %s16_s17 = sadd.s32 1, %s730_s17   ;;  %s884_s12 = smov %s714_s13 }
 0x1ec   : > { %p13_p5 = scmp.ge.s32.totalorder %s16_s17, 4   ;;  %s885_s13 = smov %s718_s14 }
 0x1ed   : > { %s886_s14 = smov %s809_s25  ;;  %s887_s15 = smov %s726_s16 }
 0x1ee   : > { %s888_s16 = smov %s890_s20  ;;  %15 = sbr.rel (!%p13_p5) target bundleno = 4 (0x4), region = 81 }
 0x1f5   :  { %459 = vsyncpa [#allocation4], 1 }
 0x1f6   :  { %461 = vsyncpa [#allocation4 + $0x1], 1 }

</bundles_post_ra>
